<compile_context>
chip_gen: v5e
topology: v5e:2x2
jax: 0.10.0
libtpu: 0.0.40
codegen_flags: <defaults>
</compile_context>

<pallas_src>
import jax
import jax.numpy as jnp
from jax.experimental import pallas as pl
from jax.experimental.pallas import tpu as pltpu


_MIN_DEFAULT_SCOPED_VMEM = 16 << 20   # v5e default scoped VMEM (smallest of v5e/v6e/v7x)
_VMEM_HEADROOM = 8 << 20


def _tpu_vmem_capacity_bytes():
    """Per-core VMEM capacity; conservative fallback if the query is unavailable."""
    try:
        return int(pltpu.get_tpu_info().vmem_capacity_bytes)
    except Exception:
        return 64 << 20   # v7x per-TC VMEM (smallest across generations)


# --------------------------------------------------------------------------- #
# Kernels
# --------------------------------------------------------------------------- #

def _highway_resident_kernel(x_ref, w_ref, b_ref, o_ref):
    """One batch tile; the full fused (E, 2E) bf16 weight stays resident in VMEM.

    x_ref : (tb, E)   input tile (native dtype, f32 here)
    w_ref : (E, 2E)   fused [W_proj | W_gate], bf16, (in, out) layout
    b_ref : (1, 2E)   fused [b_proj | b_gate], f32
    o_ref : (tb, E)   output tile
    """
    E = o_ref.shape[-1]
    x = x_ref[...]

    # Single bf16 MXU matmul for both linear layers, f32 accumulation.
    y = jnp.dot(x.astype(w_ref.dtype), w_ref[...],
                preferred_element_type=jnp.float32)
    y = y + b_ref[...].astype(jnp.float32)

    x_proj = jnp.maximum(y[:, :E], 0.0)           # relu(x @ Wp + bp)
    x_gate = jax.nn.sigmoid(y[:, E:])             # sigmoid(x @ Wg + bg)  (EUP)

    # Highway combine:  gate*proj + (1-gate)*x  ==  x + gate*(proj - x)
    x_f32 = x.astype(jnp.float32)
    o_ref[...] = (x_f32 + x_gate * (x_proj - x_f32)).astype(o_ref.dtype)


def _highway_ktiled_kernel(x_ref, xk_ref, w_ref, b_ref, o_ref, acc_ref):
    """Batch tile x K-slab: accumulate partial matmuls, finalize on last K step.

    x_ref  : (tb, E)        full input tile (for the skip connection; resident per i)
    xk_ref : (tb, tk)       K-slab of the input for the matmul
    w_ref  : (tk, 2E)       streamed bf16 weight slab
    b_ref  : (1, 2E)        fused bias, f32
    o_ref  : (tb, E)        output tile
    acc_ref: (tb, 2E) f32   accumulator scratch
    """
    k = pl.program_id(1)
    E = o_ref.shape[-1]

    @pl.when(k == 0)
    def _():
        acc_ref[...] = jnp.zeros_like(acc_ref)

    acc_ref[...] += jnp.dot(xk_ref[...].astype(w_ref.dtype), w_ref[...],
                            preferred_element_type=jnp.float32)

    @pl.when(k == pl.num_programs(1) - 1)
    def _():
        y = acc_ref[...] + b_ref[...].astype(jnp.float32)
        x_proj = jnp.maximum(y[:, :E], 0.0)
        x_gate = jax.nn.sigmoid(y[:, E:])
        x_f32 = x_ref[...].astype(jnp.float32)
        o_ref[...] = (x_f32 + x_gate * (x_proj - x_f32)).astype(o_ref.dtype)


# --------------------------------------------------------------------------- #
# Wrapper / tiling heuristics
# --------------------------------------------------------------------------- #

def fuse_highway_params(w_proj, b_proj, w_gate, b_gate, *, matmul_dtype=jnp.bfloat16):
    """Pre-fuse the two Linear layers once (hoists the concat out of the hot path).

    Returns (w_fused, b_fused) with w_fused: (E, 2E) in `matmul_dtype` (bf16 by
    default, MXU-native) and b_fused: (1, 2E) in f32.
    """
    w_fused = jnp.concatenate([jnp.asarray(w_proj), jnp.asarray(w_gate)], axis=1)
    b_fused = jnp.concatenate([jnp.asarray(b_proj).reshape(1, -1),
                               jnp.asarray(b_gate).reshape(1, -1)], axis=1)
    return w_fused.astype(matmul_dtype), b_fused.astype(jnp.float32)


def _validate_tile_b(B, tile_b):
    if B % tile_b != 0:
        raise ValueError(f"tile_b={tile_b} must divide B={B}")
    if tile_b != B and tile_b % 8 != 0:
        raise ValueError(f"tile_b={tile_b} must be a multiple of 8 (or equal B)")


def _pick_tile_b(B, per_row_bytes, budget_bytes):
    """Largest batch tile that divides B, fits the VMEM budget, and (preferably)
    leaves >= 2 grid steps so the batch axis can shard across TensorCores."""
    budget_bytes = max(int(budget_bytes), 0)
    best_single = None
    for cand in (1024, 512, 256, 128, 64, 32, 16, 8):
        if B % cand != 0 or cand * per_row_bytes > budget_bytes:
            continue
        if B // cand >= 2:
            return cand
        if best_single is None:
            best_single = cand
    if best_single is not None:
        return best_single
    return B   # full-extent block along batch is always layout-legal


def _pick_tile_k(E, two_e, w_itemsize, budget_bytes):
    """Largest K-slab (multiple of 128) whose double-buffered slab fits the budget."""
    for cand in (512, 256, 128):
        if E % cand != 0:
            continue
        if 2 * cand * two_e * w_itemsize <= budget_bytes:
            return cand
    return 128 if E % 128 == 0 else None


def highway_fused(x, w_fused, b_fused, *, tile_b=None, tile_k=None, force_ktiled=False):
    """Highway forward with pre-fused parameters.

    x       : (B, E)
    w_fused : (E, 2E)  [W_proj | W_gate], ideally bf16
    b_fused : (1, 2E)  [b_proj | b_gate], f32
    """
    B, E = x.shape
    if w_fused.shape != (E, 2 * E):
        raise ValueError(f"w_fused must be (E, 2E)=({E},{2*E}), got {w_fused.shape}")
    if b_fused.shape != (1, 2 * E):
        raise ValueError(f"b_fused must be (1, 2E)=(1,{2*E}), got {b_fused.shape}")

    x_bytes = x.dtype.itemsize
    w_bytes = w_fused.size * w_fused.dtype.itemsize
    b_bytes = b_fused.size * b_fused.dtype.itemsize

    vmem_ceiling = max(_tpu_vmem_capacity_bytes() - _VMEM_HEADROOM, 16 << 20)

    # Per-batch-row VMEM bytes: double-buffered x + out tiles, f32 (tb, 2E) intermediate.
    per_row = 4 * E * x_bytes + 16 * E

    ktiled = force_ktiled or (w_bytes + b_bytes > (3 * vmem_ceiling) // 4)
    if ktiled and E % 128 != 0:
        ktiled = False   # TODO(synk): pad E to a multiple of 128 to enable K-tiling here.

    io_bytes = 2 * B * E * x_bytes + w_bytes + b_bytes + (B * E * x_bytes if ktiled else 0)
    cost = pl.CostEstimate(
        flops=2 * B * E * (2 * E) + 6 * B * E,
        transcendentals=B * E,                    # sigmoid
        bytes_accessed=io_bytes,
    )

    if not ktiled:
        if tile_b is None:
            tile_b = _pick_tile_b(B, per_row, vmem_ceiling - w_bytes - b_bytes)
        _validate_tile_b(B, tile_b)
        grid = (B // tile_b,)
        est_vmem = w_bytes + b_bytes + tile_b * per_row
        grid_sem = ("parallel",)
        kernel = _highway_resident_kernel
        in_specs = [
            pl.BlockSpec((tile_b, E), lambda i: (i, 0)),              # x tile
            pl.BlockSpec((E, 2 * E), lambda i: (0, 0),                # resident fused W
                         pipeline_mode=pl.Buffered(buffer_count=1)),  # (single-buffered)
            pl.BlockSpec((1, 2 * E), lambda i: (0, 0),                # fused bias
                         pipeline_mode=pl.Buffered(buffer_count=1)),
        ]
        out_specs = pl.BlockSpec((tile_b, E), lambda i: (i, 0))
        scratch = []
        operands = (x, w_fused, b_fused)
    else:
        if tile_k is None:
            tile_k = _pick_tile_k(E, 2 * E, w_fused.dtype.itemsize, vmem_ceiling // 2)
        if tile_k is None or E % tile_k != 0 or tile_k % 128 != 0:
            raise ValueError(f"tile_k={tile_k} must be a multiple of 128 dividing E={E}")
        w_slab_bytes = 2 * tile_k * 2 * E * w_fused.dtype.itemsize   # double-buffered slab
        if tile_b is None:
            tile_b = _pick_tile_b(B, per_row, vmem_ceiling - w_slab_bytes - b_bytes)
        _validate_tile_b(B, tile_b)
        grid = (B // tile_b, E // tile_k)
        est_vmem = w_slab_bytes + b_bytes + tile_b * per_row
        grid_sem = ("parallel", "arbitrary")     # reduction (K) axis last
        kernel = _highway_ktiled_kernel
        in_specs = [
            pl.BlockSpec((tile_b, E), lambda i, k: (i, 0)),           # full x (skip path)
            pl.BlockSpec((tile_b, tile_k), lambda i, k: (i, k)),      # x K-slab (matmul)
            pl.BlockSpec((tile_k, 2 * E), lambda i, k: (k, 0)),       # streamed W slab
            pl.BlockSpec((1, 2 * E), lambda i, k: (0, 0),
                         pipeline_mode=pl.Buffered(buffer_count=1)),
        ]
        out_specs = pl.BlockSpec((tile_b, E), lambda i, k: (i, 0))
        scratch = [pltpu.VMEM((tile_b, 2 * E), jnp.float32)]
        operands = (x, x, w_fused, b_fused)

    compiler_kwargs = dict(dimension_semantics=grid_sem)
    # Raise the scoped-VMEM limit only when the estimate exceeds the smallest
    # per-generation default (v5e: 16 MiB); clamp to the chip's real capacity.
    if est_vmem > _MIN_DEFAULT_SCOPED_VMEM:
        compiler_kwargs["vmem_limit_bytes"] = int(
            min(est_vmem + _VMEM_HEADROOM, vmem_ceiling))

    return pl.pallas_call(
        kernel,
        out_shape=jax.ShapeDtypeStruct((B, E), x.dtype),
        grid_spec=pltpu.PrefetchScalarGridSpec(
            num_scalar_prefetch=0,
            grid=grid,
            in_specs=in_specs,
            out_specs=out_specs,
            scratch_shapes=scratch,
        ),
        compiler_params=pltpu.CompilerParams(**compiler_kwargs),
        cost_estimate=cost,
    )(*operands)


def highway(x, w_proj, b_proj, w_gate, b_gate, **kwargs):
    """Convenience wrapper: fuses the parameters (bf16) and runs the kernel.
    Prefer fusing once with `fuse_highway_params` and calling `highway_fused`."""
    w_fused, b_fused = fuse_highway_params(w_proj, b_proj, w_gate, b_gate)
    return highway_fused(x, w_fused, b_fused, **kwargs)


def highway_ref(x, w_proj, b_proj, w_gate, b_gate):
    """Pure-JAX (f32) reference identical to the PyTorch forward."""
    x_proj = jax.nn.relu(x @ w_proj + b_proj)
    x_gate = jax.nn.sigmoid(x @ w_gate + b_gate)
    return x_gate * x_proj + (1.0 - x_gate) * x


if __name__ == "__main__":
    key = jax.random.PRNGKey(0)

    def make_params(k, embed_dim):
        kwp, kbp, kwg, kbg = jax.random.split(k, 4)
        # nn.Linear default init: U(-1/sqrt(in), 1/sqrt(in)); weights pre-transposed to (in, out).
        bound = 1.0 / jnp.sqrt(jnp.float32(embed_dim))
        w_proj = jax.random.uniform(kwp, (embed_dim, embed_dim), jnp.float32, -bound, bound)
        b_proj = jax.random.uniform(kbp, (1, embed_dim), jnp.float32, -bound, bound)
        w_gate = jax.random.uniform(kwg, (embed_dim, embed_dim), jnp.float32, -bound, bound)
        b_gate = jax.random.uniform(kbg, (1, embed_dim), jnp.float32, -bound, bound)
        return w_proj, b_proj, w_gate, b_gate

    k1, k2, kx1, kx2 = jax.random.split(key, 4)

    # --- small, lane-aligned shape through the resident-weight path ---------
    batch, embed_dim = 16, 128
    x = jax.random.normal(kx1, (batch, embed_dim), dtype=jnp.float32)
    params = make_params(k1, embed_dim)
    w_fused, b_fused = fuse_highway_params(*params)       # fused once, outside hot path
    out = jax.block_until_ready(highway_fused(x, w_fused, b_fused))
    expected = highway_ref(x, *params)
    assert out.shape == (batch, embed_dim)
    # bf16 matmul operands (f32 accumulation) -> ~1e-2-level tolerance vs f32 reference.
    assert jnp.allclose(out, expected, atol=3e-2, rtol=3e-2), "resident path mismatch"

    # --- also exercise the K-tiled (streamed-weight) large-E path -----------
    batch2, embed_dim2 = 64, 256
    x2 = jax.random.normal(kx2, (batch2, embed_dim2), dtype=jnp.float32)
    params2 = make_params(k2, embed_dim2)
    w_fused2, b_fused2 = fuse_highway_params(*params2)
    out2 = jax.block_until_ready(
        highway_fused(x2, w_fused2, b_fused2, force_ktiled=True, tile_k=128))
    expected2 = highway_ref(x2, *params2)
    assert out2.shape == (batch2, embed_dim2)
    assert jnp.allclose(out2, expected2, atol=3e-2, rtol=3e-2), "K-tiled path mismatch"

    print("KERNEL_OK")
</pallas_src>

<mosaic_0001>
module attributes {stable_mosaic.version = 11 : i64} {
  func.func @_highway_resident_kernel(%arg0: i32, %arg1: memref<8x128xf32, #tpu.memory_space<vmem>>, %arg2: memref<128x256xbf16, #tpu.memory_space<vmem>>, %arg3: memref<1x256xf32, #tpu.memory_space<vmem>>, %arg4: memref<8x128xf32, #tpu.memory_space<vmem>>) attributes {dimension_semantics = [#tpu.dimension_semantics<parallel>], iteration_bounds = array<i64: 2>, scalar_prefetch = 0 : i64, scratch_operands = 0 : i64, tpu.core_type = #tpu.core_type<tc>, window_params = [{transform_indices = @transform_0, window_bounds = array<i64: 8, 128>}, {pipeline_mode = #tpu.pipeline_mode<synchronous>, transform_indices = @transform_1, window_bounds = array<i64: 128, 256>}, {pipeline_mode = #tpu.pipeline_mode<synchronous>, transform_indices = @transform_2, window_bounds = array<i64: 1, 256>}, {transform_indices = @transform_3, window_bounds = array<i64: 8, 128>}]} {
    %c0 = arith.constant 0 : index
    %c0_0 = arith.constant 0 : index
    %0 = vector.load %arg1[%c0, %c0_0] : memref<8x128xf32, #tpu.memory_space<vmem>>, vector<8x128xf32>
    %1 = arith.truncf %0 : vector<8x128xf32> to vector<8x128xbf16>
    %c0_1 = arith.constant 0 : index
    %c0_2 = arith.constant 0 : index
    %2 = vector.load %arg2[%c0_1, %c0_2] : memref<128x256xbf16, #tpu.memory_space<vmem>>, vector<128x256xbf16>
    %cst = arith.constant dense<0.000000e+00> : vector<8x256xf32>
    %3 = tpu.matmul %1, %2, %cst {dimension_numbers = #tpu.dot_dimension_numbers<[1], [0], [0], [1], [0, 0, 1, 1], [], []>} : vector<8x128xbf16>, vector<128x256xbf16>, vector<8x256xf32> -> vector<8x256xf32>
    %c0_3 = arith.constant 0 : index
    %c0_4 = arith.constant 0 : index
    %4 = vector.load %arg3[%c0_3, %c0_4] : memref<1x256xf32, #tpu.memory_space<vmem>>, vector<1x256xf32>
    %5 = vector.broadcast %4 : vector<1x256xf32> to vector<8x256xf32>
    %6 = arith.addf %3, %5 : vector<8x256xf32>
    %7 = vector.extract_strided_slice %6 {offsets = [0, 0], sizes = [8, 128], strides = [1, 1]} : vector<8x256xf32> to vector<8x128xf32>
    %cst_5 = arith.constant 0.000000e+00 : f32
    %8 = vector.broadcast %cst_5 : f32 to vector<8x128xf32>
    %9 = arith.maximumf %7, %8 : vector<8x128xf32>
    %10 = vector.extract_strided_slice %6 {offsets = [0, 128], sizes = [8, 128], strides = [1, 1]} : vector<8x256xf32> to vector<8x128xf32>
    %11 = arith.negf %10 : vector<8x128xf32>
    %12 = math.exp %11 : vector<8x128xf32>
    %cst_6 = arith.constant 1.000000e+00 : f32
    %13 = vector.broadcast %cst_6 : f32 to vector<8x128xf32>
    %14 = arith.addf %13, %12 : vector<8x128xf32>
    %15 = arith.divf %13, %14 : vector<8x128xf32>
    %16 = arith.subf %9, %0 : vector<8x128xf32>
    %17 = arith.mulf %15, %16 : vector<8x128xf32>
    %18 = arith.addf %0, %17 : vector<8x128xf32>
    %c0_7 = arith.constant 0 : index
    %c0_8 = arith.constant 0 : index
    %19 = vector.load %arg4[%c0_7, %c0_8] : memref<8x128xf32, #tpu.memory_space<vmem>>, vector<8x128xf32>
    tpu.vector_store %arg4[%c0_7, %c0_8], %18 {strides = array<i32>} : memref<8x128xf32, #tpu.memory_space<vmem>>, vector<8x128xf32>,
    return
  }
  func.func @transform_0(%arg0: i32) -> (i32, i32) {
    %c0_i32 = arith.constant 0 : i32
    %c0_i32_0 = arith.constant 0 : i32
    return %arg0, %c0_i32 : i32, i32
  }
  func.func @transform_1(%arg0: i32) -> (i32, i32) {
    %c0_i32 = arith.constant 0 : i32
    %c0_i32_0 = arith.constant 0 : i32
    %c0_i32_1 = arith.constant 0 : i32
    return %c0_i32, %c0_i32_0 : i32, i32
  }
  func.func @transform_2(%arg0: i32) -> (i32, i32) {
    %c0_i32 = arith.constant 0 : i32
    %c0_i32_0 = arith.constant 0 : i32
    %c0_i32_1 = arith.constant 0 : i32
    return %c0_i32, %c0_i32_0 : i32, i32
  }
  func.func @transform_3(%arg0: i32) -> (i32, i32) {
    %c0_i32 = arith.constant 0 : i32
    %c0_i32_0 = arith.constant 0 : i32
    return %arg0, %c0_i32 : i32, i32
  }
}

</mosaic_0001>

<bundles_post_ra>
// kernel: tpu_custom_call.1
= control target key start
LH: loop header
LB: loop body
LE: loop exit
PB: predicated region body
PF: predicated region fallthrough
CT: control target
= control target key end

     0   :  { %8 = vsyncpa [#allocation3], 0  ;;  %s986_s0 = inlined_call_operand.hbm [shape: f32[16,128], index: 0, kind: input, shape index: {}]   ;;  %s987_s1 = inlined_call_operand.hbm [shape: bf16[128,256], index: 1, kind: input, shape index: {}]   ;;  %s988_s2 = inlined_call_operand.hbm [shape: f32[1,256], index: 2, kind: input, shape index: {}]   ;;  %s989_s3 = inlined_call_operand.hbm [shape: f32[16,128], index: 3, kind: output, shape index: {}]  }
   0x1   :  { %10 = vsyncpa [#allocation3 + $0x1], 0 }
   0x2   :  { %11 = vsyncpa [#allocation6], 0 }
   0x3   :  { %12 = vsyncpa [#allocation4], 0 }
   0x4   :  { %14 = vsyncpa [#allocation4 + $0x1], 0  ;;  %s834_s12 = smov 0   ;;  %s836_s13 = smov 0  }
   0x5   :  { %s838_s14 = smov 0   ;;  %s840_s15 = smov 0  }
   0x6 LB: > { %s130_s18 = sshll.u32 %s987_s1, 4  ;;  %s858_s19 = sadd.s32 4294967295, %s808_s15   ;;  %s808_s15 = sphi %s840_s15, %s1000_s15   ;;  %s804_s14 = sphi %s838_s14, %s999_s14   ;;  %s800_s13 = sphi %s836_s13, %s998_s13   ;;  %s796_s12 = sphi %s834_s12, %s997_s12   ;;  %s131_s18 = int_to_ptr.hbm [resolvable:$true] %s130_s18 }
   0x7   : > { %p479_p0 = scmp.ge.s32.totalorder %s808_s15, 1  ;;  %p41_p1 = scmp.eq.s32.totalorder %s858_s19, 0 }
   0x8   : > { %p119_p2 = scmp.lt.s32.totalorder %s808_s15, 3  ;;  %s810_s21 = smov [#allocation5]  }
   0x9   : > { %s132_s22 = sshll.u32 %s810_s21, 4  ;;  %s145_s25 = sshll.u32 %s988_s2, 4  ;;  %s133_s22 = int_to_ptr.vmem [resolvable:$true] %s132_s22  ;;  %s146_s25 = int_to_ptr.hbm [resolvable:$true] %s145_s25 }
   0xa   : > { %p863_p3 = pnand %p479_p0, %p119_p2  ;;  %s811_s26 = smov [#allocation7]  }
   0xb   : > { %s147_s27 = sshll.u32 %s811_s26, 4  ;;  %s812_s28 = smov 128   ;;  %s148_s27 = int_to_ptr.vmem [resolvable:$true] %s147_s27 }
   0xc   : > { %p587_p4 = pneg %p863_p3  ;;  %s813_s29 = smov 8  }
   0xd   : > { %s478_s30 = sadd.s32 4294967294, %s808_s15   ;;  %s877_s4 = sadd.s32 1, %s808_s15  }
   0xe   : > { %p588_p6 = pnand %p587_p4, %p41_p1  ;;  %s24_s5 = ssub.s32 %s808_s15, %s877_s4 }
   0xf   : > { %s27_s6 = sadd.s32 1, %s804_s14  ;;  %p25_p7 = scmp.eq.s32.totalorder %s24_s5, 0 }
  0x10   : > { %590 = dma.hbm_to_vmem [thread:$0]  (!%p588_p6), %s131_s18, 2048, %s133_s22, [#allocation6], %s812_s28, %s812_s28, %s813_s29  }
  0x11   : > { %593 = dma.hbm_to_vmem [thread:$0]  (!%p588_p6), %s146_s25, 32, %s148_s27, [#allocation6]  }
  0x12   : > { %p34_p8 = scmp.ne.s32.totalorder %s804_s14, %s800_s13  ;;  %p35_p9 = scmp.eq.s32.totalorder %s808_s15, 0 }
  0x13   : > { %p40_p10 = scmp.ne.s32.totalorder %s800_s13, %s796_s12  ;;  %p106_p13 = scmp.eq.s32.totalorder %s858_s19, 1 }
  0x14   : > { %s888_s7 = scalar_select %p25_p7, %s804_s14, %s27_s6  }
  0x15   : > { %p890_p11 = por %p35_p9, %p34_p8  ;;  %p896_p12 = por %p41_p1, %p40_p10 }
  0x16   : > { %p112_p0 = scmp.eq.s32.totalorder %s478_s30, 1  ;;  %p604_p2 = scmp.lt.s32.totalorder %s808_s15, 2 }
  0x17   : > { %s158_s10 = sand.u32 1, %s804_s14   ;;  %p903_p4 = por %p106_p13, %p34_p8 }
  0x18   : > { %p907_p6 = por %p112_p0, %p40_p10  ;;  %s483_s17 = sshll.u32 %s158_s10, 3 }
  0x19   : > { %s484_s18 = sshll.u32 %s808_s15, 3  ;;  %s162_s24 = scalar_lea.vmem [#allocation2], %s483_s17 }
  0x1a   : > { %s166_s23 = scalar_lea.hbm %s986_s0, %s484_s18  ;;  %s170_s25 = sshll.u32 %s162_s24, 4  ;;  %s171_s25 = int_to_ptr.vmem [resolvable:$true] %s170_s25 }
  0x1b   : > { %s168_s26 = sshll.u32 %s166_s23, 4  ;;  %p917_p7 = pnand %p604_p2, %p890_p11  ;;  %s169_s26 = int_to_ptr.hbm [resolvable:$true] %s168_s26 }
  0x1c   : > { %s159_s28 = scalar_lea.sflag [#allocation3], %s158_s10  ;;  %s708_s29 = sshra.s32 %s169_s26, 4  ;;  %s709_s29 = int_to_ptr.hbm [resolvable:$true] %s708_s29 }
  0x1d   : > { %s710_s30 = scalar_lea.hbm %s709_s29, 8  ;;  %p712_p9 = pneg %p917_p7 }
  0x1e   : > { %p711_p8 = scmp.ne.s32.totalorder %s709_s29, %s710_s30  ;;  %s715_s17 = scalar_lea.hbm %s986_s0, 16 }
  0x1f   : > { %p716_p11 = scmp.lt.s32.totalorder %s709_s29, %s986_s0  ;;  %p717_p0 = scmp.lt.s32.totalorder %s715_s17, %s710_s30 }
  0x20   : > { %p713_p10 = pnand %p712_p9, %p711_p8 }
  0x21   : > { %p718_p2 = por %p717_p0, %p716_p11 }
  0x22   : > { %p714_p13 = pneg %p713_p10 }
  0x24   : > { %p719_p5 = pnand %p718_p2, %p714_p13 }
  0x26   : > { %722 = shalt.err (!%p719_p5)
}
  0x27   : > { %597 = dma.hbm_to_vmem [thread:$0]  (!%p917_p7), %s169_s26, 128, %s171_s25, %s159_s28  }
  0x28   : > { %179 = sbr.rel (%p863_p3) target bundleno = 245 (0xf5), region = 32  ;;  %s934_s10 = sand.u32 (!%p863_p3), 1, %s800_s13  }
  0x29   : > { %s486_s21 = sshll.u32 (!%p863_p3), %s934_s10, 3  ;;  %s182_s22 = scalar_lea.sflag (!%p863_p3), [#allocation3], %s934_s10 }
  0x2a   : > { %s940_s23 = scalar_lea.vmem (!%p863_p3), [#allocation2], %s486_s21 }
  0x2d   : > { %783 = dma.done.wait (%p896_p12), %s182_s22, 128  }
  0x2e   : > { %785 = vsyncadd (%p896_p12), %s182_s22, 4294967168 }
  0x2f   : > { %787 = dma.done.wait (%p41_p1), [#allocation6], 2080  }
  0x30   : > { %789 = vsyncadd (%p41_p1), [#allocation6], 4294965216  ;;  %v573_v0 = vld [vmem:[#allocation5 + $0x74] sm:$0xf]  ;;  %v550_v1 = vld [vmem:[#allocation5 + $0x78] sm:$0xf0] }
  0x31   : > { %v571_v2 = vld [vmem:[#allocation5 + $0x64] sm:$0xf]  ;;  %v553_v3 = vor.u32 %v573_v0, %v550_v1  ;;  %v542_v4 = vld [vmem:[#allocation5 + $0x68] sm:$0xf0]  ;;  %v548_v5 = vld [vmem:[#allocation5 + $0x70] sm:$0xf] }
  0x32   : > { %v545_v6 = vor.u32 %v571_v2, %v542_v4  ;;  %v569_v7 = vld [vmem:[#allocation5 + $0x54] sm:$0xf]  ;;  %v574_v8 = vld [vmem:[#allocation5 + $0x74] sm:$0xf0]  ;;  %v534_v9 = vld [vmem:[#allocation5 + $0x58] sm:$0xf0] }
  0x33   : > { %336 = vmatpush.bf16.msra.mxu1 %v553_v3  ;;  %v549_v10 = vor.u32 %v574_v8, %v548_v5  ;;  %v540_v11 = vld [vmem:[#allocation5 + $0x60] sm:$0xf]  ;;  %v572_v12 = vld [vmem:[#allocation5 + $0x64] sm:$0xf0]  ;;  %v537_v14 = vor.u32 %v569_v7, %v534_v9  ;;  %v532_v15 = vld [vmem:[#allocation5 + $0x50] sm:$0xf] }
  0x34   : > { %v541_v13 = vor.u32 %v572_v12, %v540_v11  ;;  %v570_v16 = vld [vmem:[#allocation5 + $0x54] sm:$0xf0]  ;;  %v567_v17 = vld [vmem:[#allocation5 + $0x44] sm:$0xf]  ;;  %v526_v18 = vld [vmem:[#allocation5 + $0x48] sm:$0xf0] }
  0x35   : > { %323 = vmatpush.bf16.msra.mxu0 %v549_v10  ;;  %v533_v19 = vor.u32 %v570_v16, %v532_v15  ;;  %v529_v20 = vor.u32 %v567_v17, %v526_v18  ;;  %v524_v21 = vld [vmem:[#allocation5 + $0x40] sm:$0xf]  ;;  %v568_v22 = vld [vmem:[#allocation5 + $0x44] sm:$0xf0]  ;;  %v565_v23 = vld [vmem:[#allocation5 + $0x34] sm:$0xf] }
  0x36   : > { %v518_v24 = vld [vmem:[#allocation5 + $0x38] sm:$0xf0]  ;;  %v525_v25 = vor.u32 %v568_v22, %v524_v21  ;;  %v516_v27 = vld [vmem:[#allocation5 + $0x30] sm:$0xf]  ;;  %v566_v28 = vld [vmem:[#allocation5 + $0x34] sm:$0xf0] }
  0x37   : > { %337 = vmatpush.bf16.msra.mxu1 %v545_v6  ;;  %v521_v26 = vor.u32 %v565_v23, %v518_v24  ;;  %v563_v29 = vld [vmem:[#allocation5 + $0x24] sm:$0xf]  ;;  %v510_v30 = vld [vmem:[#allocation5 + $0x28] sm:$0xf0]  ;;  %v517_v31 = vor.u32 %v566_v28, %v516_v27  ;;  %v508_v33 = vld [vmem:[#allocation5 + $0x20] sm:$0xf] }
  0x38   : > { %v513_v32 = vor.u32 %v563_v29, %v510_v30  ;;  %v564_v34 = vld [vmem:[#allocation5 + $0x24] sm:$0xf0]  ;;  %v561_v35 = vld [vmem:[#allocation5 + $0x14] sm:$0xf]  ;;  %v502_v36 = vld [vmem:[#allocation5 + $0x18] sm:$0xf0] }
  0x39   : > { %324 = vmatpush.bf16.msra.mxu0 %v541_v13  ;;  %v509_v37 = vor.u32 %v564_v34, %v508_v33  ;;  %v505_v38 = vor.u32 %v561_v35, %v502_v36  ;;  %v500_v39 = vld [vmem:[#allocation5 + $0x10] sm:$0xf]  ;;  %v562_v40 = vld [vmem:[#allocation5 + $0x14] sm:$0xf0]  ;;  %v559_v41 = vld [vmem:[#allocation5 + $0x4] sm:$0xf] }
  0x3a   : > { %v494_v42 = vld [vmem:[#allocation5 + $0x8] sm:$0xf0]  ;;  %v501_v43 = vor.u32 %v562_v40, %v500_v39  ;;  %v219_v45 = vld [vmem:[%s940_s23] sm:$0xff]  ;;  %v492_v46 = vld [vmem:[#allocation5] sm:$0xf]  ;;  %s556_s20 = sshll.u32 %s858_s19, 3 }
  0x3b   : > { %338 = vmatpush.bf16.msra.mxu1 %v537_v14  ;;  %v497_v44 = vor.u32 %v559_v41, %v494_v42  ;;  %v560_v47 = vld [vmem:[#allocation5 + $0x4] sm:$0xf0]  ;;  %v220_v48 = vpack.c.bf16 %v219_v45, %v219_v45  ;;  %v237_v50 = vld [vmem:[#allocation7] sm:$0x3]  ;;  %s384_s25 = scalar_lea.hbm %s989_s3, %s556_s20  ;;  %s218_s26 = scalar_lea.vmem [#allocation8], %s486_s21 }
  0x3c   : > { %v493_v49 = vor.u32 %v560_v47, %v492_v46  ;;  %v240_v51 = vperm.slane %v237_v50, 1  ;;  %v239_v60 = vperm.slane %v237_v50, 0  ;;  %s386_s19 = sshll.u32 %s218_s26, 4  ;;  %s388_s27 = sshll.u32 %s384_s25, 4  ;;  %s387_s19 = int_to_ptr.vmem [resolvable:$true] %s386_s19  ;;  %s389_s27 = int_to_ptr.hbm [resolvable:$true] %s388_s27 }
  0x3d   : > { %325 = vmatpush.bf16.msra.mxu0 %v533_v19  ;;  %s374_s28 = scalar_lea.sflag [#allocation4], %s934_s10  ;;  %s752_s29 = sshra.s32 %s389_s27, 4  ;;  %s753_s29 = int_to_ptr.hbm [resolvable:$true] %s752_s29 }
  0x3e   : > { %s754_s30 = scalar_lea.hbm %s753_s29, 8  ;;  %s758_s17 = scalar_lea.hbm %s989_s3, 16 }
  0x3f   : > { %339 = vmatpush.bf16.msra.mxu1 %v529_v20  ;;  %p755_p1 = scmp.ne.s32.totalorder %s753_s29, %s754_s30  ;;  %p759_p12 = scmp.lt.s32.totalorder %s753_s29, %s989_s3 }
  0x40   : > { %p760_p7 = scmp.lt.s32.totalorder %s758_s17, %s754_s30 }
  0x41   : > { %326 = vmatpush.bf16.msra.mxu0 %v525_v25  ;;  %p756_p3 = pnand %p755_p1, %p903_p4 }
  0x42   : > { %p761_p8 = por %p760_p7, %p759_p12 }
  0x43   : > { %340 = vmatpush.bf16.msra.mxu1 %v521_v26  ;;  %p757_p5 = pneg %p756_p3 }
  0x45   : > { %327 = vmatpush.bf16.msra.mxu0 %v517_v31  ;;  %p762_p9 = pnand %p761_p8, %p757_p5 }
  0x47   : > { %341 = vmatpush.bf16.msra.mxu1 %v513_v32 }
  0x49   : > { %328 = vmatpush.bf16.msra.mxu0 %v509_v37 }
  0x4b   : > { %342 = vmatpush.bf16.msra.mxu1 %v505_v38 }
  0x4d   : > { %329 = vmatpush.bf16.msra.mxu0 %v501_v43 }
  0x4f   : > { %343 = vmatpush.bf16.msra.mxu1 %v497_v44 }
  0x51   : > { %330 = vmatpush.bf16.msra.mxu0 %v493_v49 }
  0x52   : > { %344 = vmatmul.bf16.vlgmr.msra.gmra.mxu1 %v220_v48 }
  0x54   : > { %331 = vmatmul.bf16.vlgmr.msra.gmra.mxu0 %v220_v48 }
  0xcf   : > { %v345_v52 = vpop.f32.mrf.mxu1 }
  0xd0   : > { %v346_v53 = vadd.f32 %v345_v52, %v240_v51 }
  0xd1   : > { %v332_v55 = vpop.f32.mrf.mxu0 }
  0xd2   : > { %v554_v54 = vmul.f32 -1.442695, %v346_v53  ;;  %v333_v61 = vadd.f32 %v332_v55, %v239_v60 }
  0xd4   : > { %644 = vpow2.f32 %v554_v54  ;;  %v349_v1 = vmax.f32 %v333_v61, 0.0 }
  0xd6   : > { %v369_v6 = vsub.f32 %v349_v1, %v219_v45 }
  0xd7   : > { %v347_v56 = vpop.f32.mrf.mxu1 }
  0xd9   : > { %v334_v58 = vpop.f32.mrf.mxu0 }
  0xda   : > { %v645_v57 = vpop.eup %644 }
  0xdb   : > { %v353_v59 = vadd.f32 1.0, %v645_v57 }
  0xdd   : > { %646 = vrcp.f32 %v353_v59  ;;  %v365_v2 = vand.u32 2147483648, %v353_v59  ;;  %v363_v4 = vand.u32 2147483647, %v353_v59  ;;  %vm359_vm1 = vweird.f32 %v353_v59 }
  0xdf   : > { %v366_v7 = vor.u32 1.1754944e-38, %v365_v2  ;;  %vm364_vm3 = vcmp.eq.f32.partialorder %v363_v4, 8.507059e+37 }
  0xe3   : > { %v647_v62 = vpop.eup %646 }
  0xe4   : > { %v355_v63 = vmul.f32 %v647_v62, %v353_v59  ;;  %vm360_vm0 = vweird.f32 %v647_v62 }
  0xe5   : > { %vm361_vm2 = vmor %vm359_vm1, %vm360_vm0 }
  0xe6   : > { %v356_v0 = vsub.f32 1.0, %v355_v63 }
  0xe8   : > { %v357_v3 = vmul.f32 %v647_v62, %v356_v0 }
  0xea   : > { %v358_v5 = vadd.f32 %v647_v62, %v357_v3 }
  0xec   : > { %v362_v8 = vsel %vm361_vm2, %v647_v62, %v358_v5 }
  0xed   : > { %v367_v9 = vsel %vm364_vm3, %v366_v7, %v362_v8 }
  0xee   : > { %v370_v10 = vmul.f32 %v369_v6, %v367_v9 }
  0xf0   : > { %v371_v11 = vadd.f32 %v370_v10, %v219_v45 }
  0xf2   : > { %372 = vst [vmem:[%s218_s26] sm:$0xff] %v371_v11 }
  0xf3   : > { %765 = shalt.err (!%p762_p9)
}
  0xf4   : > { %585 = dma.vmem_to_hbm [thread:$0]  (%p903_p4), %s387_s19, 128, %s389_s27, %s374_s28  }
  0xf5 PF: > { %s400_s10 = sand.u32 1, %s796_s12   ;;  %p996_p10 = scmp.ge.s32.totalorder %s808_s15, 2 }
  0xf6   : > { %s401_s21 = scalar_lea.sflag [#allocation4], %s400_s10 }
  0xf7   : > { %p599_p13 = pnand %p996_p10, %p907_p6 }
  0xf9   : > { %p600_p11 = pneg %p599_p13 }
  0xfb   : > { %791 = dma.done.wait (%p600_p11), %s401_s21, 128  }
  0xfc   : > { %793 = vsyncadd (%p600_p11), %s401_s21, 4294967168  ;;  %p17_p0 = scmp.ge.s32.totalorder %s877_s4, 4   ;;  %s997_s12 = smov %s800_s13 }
  0xfd   : > { %s998_s13 = smov %s804_s14  ;;  %s999_s14 = smov %s888_s7 }
  0xfe   : > { %s1000_s15 = smov %s877_s4  ;;  %19 = sbr.rel (!%p17_p0) target bundleno = 6 (0x6), region = 85 }
 0x103   :  { %407 = vsyncpa [#allocation3], 1 }
 0x104   :  { %409 = vsyncpa [#allocation3 + $0x1], 1 }
 0x105   :  { %410 = vsyncpa [#allocation6], 1 }
 0x106   :  { %411 = vsyncpa [#allocation4], 1 }
 0x107   :  { %413 = vsyncpa [#allocation4 + $0x1], 1 }

</bundles_post_ra>
